<compile_context>
chip_gen: v6e
topology: v6e:2x2x1
jax: 0.10.0
libtpu: 0.0.40
codegen_flags: <defaults>
</compile_context>

<pallas_src>
import functools

import jax
import jax.numpy as jnp
from jax.experimental import pallas as pl
from jax.experimental.pallas import tpu as pltpu


def _round_up(x, m):
    return ((x + m - 1) // m) * m


def iris_mlp_kernel(x_ref, w1_ref, b1_ref, w2_ref, b2_ref, w3_ref, b3_ref, o_ref):
    # One (tile_b, n_input) slab of the batch; the whole 3-layer MLP is fused.
    x = x_ref[...].astype(w1_ref.dtype)                              # in-kernel f32->bf16 cast
    h1 = jnp.dot(x, w1_ref[...], preferred_element_type=jnp.float32) + b1_ref[...]
    h1 = jnp.maximum(h1, 0.0)                                        # f32 ReLU
    h2 = jnp.dot(h1.astype(w2_ref.dtype), w2_ref[...],
                 preferred_element_type=jnp.float32) + b2_ref[...]
    h2 = jnp.maximum(h2, 0.0)                                        # f32 ReLU
    out = jnp.dot(h2.astype(w3_ref.dtype), w3_ref[...],
                  preferred_element_type=jnp.float32) + b3_ref[...]  # (tile_b, n_output) f32
    o_ref[...] = out.astype(o_ref.dtype)


def prepare_params(params):
    """One-time conversion of raw f32 params to the kernel layout.

    Weights: (in_features, out_features) bf16 (MXU operands).
    Biases:  (1, out_features) f32 (VPU add in f32).
    Call once and reuse across forward calls.
    """
    w1, b1, w2, b2, w3, b3 = params
    bf = jnp.bfloat16
    return (
        jnp.asarray(w1, bf),
        jnp.asarray(b1, jnp.float32).reshape(1, -1),
        jnp.asarray(w2, bf),
        jnp.asarray(b2, jnp.float32).reshape(1, -1),
        jnp.asarray(w3, bf),
        jnp.asarray(b3, jnp.float32).reshape(1, -1),
    )


@functools.partial(jax.jit, static_argnames=("tile_b",))
def iris_model_forward(x, prepared_params, *, tile_b=4096):
    """Fused Iris MLP forward.

    x: (B, n_input) float32.
    prepared_params: output of prepare_params() (bf16 weights, f32 (1, out) biases).
    """
    w1, b1, w2, b2, w3, b3 = prepared_params
    n_input, hidden = w1.shape
    n_output = w3.shape[1]
    B = x.shape[0]
    x = jnp.asarray(x, jnp.float32)

    # ---- batch tiling (grid over batch, parallel axis) ----
    b_ceil = _round_up(B, 8)
    tile_b = max(8, min(int(tile_b), b_ceil))
    if b_ceil > 8:
        # keep >= 2 grid steps so v7x can use both TensorCores
        tile_b = min(tile_b, _round_up(pl.cdiv(b_ceil, 2), 8))
    tile_b = _round_up(tile_b, 8)
    b_pad = _round_up(B, tile_b)
    if b_pad != B:
        x = jnp.pad(x, ((0, b_pad - B), (0, 0)))
    grid = (pl.cdiv(b_pad, tile_b),)

    bf_bytes = jnp.dtype(jnp.bfloat16).itemsize
    cost = pl.CostEstimate(
        flops=2 * B * (n_input * hidden + hidden * hidden + hidden * n_output),
        transcendentals=0,
        bytes_accessed=(
            b_pad * n_input * 4                                                # x stream (f32)
            + (n_input * hidden + hidden * hidden + hidden * n_output) * bf_bytes
            + (2 * hidden + n_output) * 4                                      # biases (f32)
            + b_pad * n_output * 4                                             # output stream (f32)
        ),
    )

    rep = lambda i: (0, 0)  # weights / biases: same block every grid step -> VMEM-resident
    out = pl.pallas_call(
        iris_mlp_kernel,
        out_shape=jax.ShapeDtypeStruct((b_pad, n_output), jnp.float32),
        grid=grid,
        in_specs=[
            pl.BlockSpec((tile_b, n_input), lambda i: (i, 0)),   # x tile streams (f32)
            pl.BlockSpec((n_input, hidden), rep),
            pl.BlockSpec((1, hidden), rep),
            pl.BlockSpec((hidden, hidden), rep),
            pl.BlockSpec((1, hidden), rep),
            pl.BlockSpec((hidden, n_output), rep),
            pl.BlockSpec((1, n_output), rep),
        ],
        out_specs=pl.BlockSpec((tile_b, n_output), lambda i: (i, 0)),
        compiler_params=pltpu.CompilerParams(
            dimension_semantics=("parallel",),        # lets v7x use both TensorCores
            vmem_limit_bytes=32 * 1024 * 1024,        # tiny blocks; well under all scoped limits
        ),
        cost_estimate=cost,
    )(x, w1, b1, w2, b2, w3, b3)

    return out[:B] if b_pad != B else out


def init_params(key, n_input, n_output, hidden_size):
    """Deterministic init mimicking PyTorch nn.Linear (uniform +/- 1/sqrt(fan_in))."""
    def linear(k, fan_in, fan_out):
        kw, kb = jax.random.split(k)
        bound = 1.0 / jnp.sqrt(fan_in)
        w = jax.random.uniform(kw, (fan_in, fan_out), jnp.float32, -bound, bound)
        b = jax.random.uniform(kb, (1, fan_out), jnp.float32, -bound, bound)
        return w, b

    k1, k2, k3 = jax.random.split(key, 3)
    w1, b1 = linear(k1, n_input, hidden_size)
    w2, b2 = linear(k2, hidden_size, hidden_size)
    w3, b3 = linear(k3, hidden_size, n_output)
    return w1, b1, w2, b2, w3, b3


def reference_forward(x, params, compute_dtype=jnp.float32):
    """Pure-JAX reference. With compute_dtype=bf16 it mirrors the kernel's casts."""
    w1, b1, w2, b2, w3, b3 = params
    cd = compute_dtype
    h1 = jnp.dot(x.astype(cd), w1.astype(cd), preferred_element_type=jnp.float32) + b1
    h1 = jnp.maximum(h1, 0.0)
    h2 = jnp.dot(h1.astype(cd), w2.astype(cd), preferred_element_type=jnp.float32) + b2
    h2 = jnp.maximum(h2, 0.0)
    return jnp.dot(h2.astype(cd), w3.astype(cd), preferred_element_type=jnp.float32) + b3


if __name__ == "__main__":
    # Iris-like setup: 4 input features, 3 output classes, hidden_size=8, batch=8.
    n_input, n_output, hidden_size, batch = 4, 3, 8, 8

    key = jax.random.PRNGKey(0)
    kx, kp = jax.random.split(key)
    x = jax.random.normal(kx, (batch, n_input), dtype=jnp.float32)
    params = init_params(kp, n_input, n_output, hidden_size)
    prepared = prepare_params(params)  # one-time weight/bias conversion

    out = jax.block_until_ready(iris_model_forward(x, prepared))
    assert out.shape == (batch, n_output)

    ref_bf16 = reference_forward(x, params, jnp.bfloat16)  # same casts as kernel
    ref_f32 = reference_forward(x, params, jnp.float32)    # full-precision sanity
    # Relative tolerances scaled for bf16 mantissa (~3 decimal digits).
    assert jnp.allclose(out, ref_bf16, rtol=1e-2, atol=1e-3), "mismatch vs bf16 reference"
    assert jnp.allclose(out, ref_f32, rtol=5e-2, atol=5e-2), "mismatch vs f32 reference"

    # Exercise the grid / padding path: ragged batch, multiple tiles per grid.
    x2 = jax.random.normal(jax.random.PRNGKey(1), (37, n_input), dtype=jnp.float32)
    out2 = jax.block_until_ready(iris_model_forward(x2, prepared, tile_b=16))
    ref2 = reference_forward(x2, params, jnp.bfloat16)
    assert out2.shape == (37, n_output)
    assert jnp.allclose(out2, ref2, rtol=1e-2, atol=1e-3), "mismatch on tiled batch"

    # Exercise the large-default-tile path (tile capped to give >= 2 grid steps).
    x3 = jax.random.normal(jax.random.PRNGKey(2), (1024, n_input), dtype=jnp.float32)
    out3 = jax.block_until_ready(iris_model_forward(x3, prepared))
    ref3 = reference_forward(x3, params, jnp.bfloat16)
    assert out3.shape == (1024, n_output)
    assert jnp.allclose(out3, ref3, rtol=1e-2, atol=1e-3), "mismatch on large batch"

    print("KERNEL_OK")
</pallas_src>

<mosaic_0001>
module attributes {stable_mosaic.version = 11 : i64} {
  func.func @iris_mlp_kernel(%arg0: i32, %arg1: memref<8x4xf32, #tpu.memory_space<vmem>>, %arg2: memref<4x8xbf16, #tpu.memory_space<vmem>>, %arg3: memref<1x8xf32, #tpu.memory_space<vmem>>, %arg4: memref<8x8xbf16, #tpu.memory_space<vmem>>, %arg5: memref<1x8xf32, #tpu.memory_space<vmem>>, %arg6: memref<8x3xbf16, #tpu.memory_space<vmem>>, %arg7: memref<1x3xf32, #tpu.memory_space<vmem>>, %arg8: memref<8x3xf32, #tpu.memory_space<vmem>>) attributes {dimension_semantics = [#tpu.dimension_semantics<parallel>], iteration_bounds = array<i64: 1>, scalar_prefetch = 0 : i64, scratch_operands = 0 : i64, tpu.core_type = #tpu.core_type<tc>, window_params = [{transform_indices = @transform_0, window_bounds = array<i64: 8, 4>}, {pipeline_mode = #tpu.pipeline_mode<synchronous>, transform_indices = @transform_1, window_bounds = array<i64: 4, 8>}, {pipeline_mode = #tpu.pipeline_mode<synchronous>, transform_indices = @transform_2, window_bounds = array<i64: 1, 8>}, {pipeline_mode = #tpu.pipeline_mode<synchronous>, transform_indices = @transform_3, window_bounds = array<i64: 8, 8>}, {pipeline_mode = #tpu.pipeline_mode<synchronous>, transform_indices = @transform_4, window_bounds = array<i64: 1, 8>}, {pipeline_mode = #tpu.pipeline_mode<synchronous>, transform_indices = @transform_5, window_bounds = array<i64: 8, 3>}, {pipeline_mode = #tpu.pipeline_mode<synchronous>, transform_indices = @transform_6, window_bounds = array<i64: 1, 3>}, {transform_indices = @transform_7, window_bounds = array<i64: 8, 3>}]} {
    %c0 = arith.constant 0 : index
    %c0_0 = arith.constant 0 : index
    %0 = vector.load %arg1[%c0, %c0_0] : memref<8x4xf32, #tpu.memory_space<vmem>>, vector<8x4xf32>
    %1 = arith.truncf %0 : vector<8x4xf32> to vector<8x4xbf16>
    %c0_1 = arith.constant 0 : index
    %c0_2 = arith.constant 0 : index
    %2 = vector.load %arg2[%c0_1, %c0_2] : memref<4x8xbf16, #tpu.memory_space<vmem>>, vector<4x8xbf16>
    %cst = arith.constant dense<0.000000e+00> : vector<8x8xf32>
    %3 = tpu.matmul %1, %2, %cst {dimension_numbers = #tpu.dot_dimension_numbers<[1], [0], [0], [1], [0, 0, 1, 1], [], []>} : vector<8x4xbf16>, vector<4x8xbf16>, vector<8x8xf32> -> vector<8x8xf32>
    %c0_3 = arith.constant 0 : index
    %c0_4 = arith.constant 0 : index
    %4 = vector.load %arg3[%c0_3, %c0_4] : memref<1x8xf32, #tpu.memory_space<vmem>>, vector<1x8xf32>
    %5 = vector.broadcast %4 : vector<1x8xf32> to vector<8x8xf32>
    %6 = arith.addf %3, %5 : vector<8x8xf32>
    %cst_5 = arith.constant 0.000000e+00 : f32
    %7 = vector.broadcast %cst_5 : f32 to vector<8x8xf32>
    %8 = arith.maximumf %6, %7 : vector<8x8xf32>
    %9 = arith.truncf %8 : vector<8x8xf32> to vector<8x8xbf16>
    %c0_6 = arith.constant 0 : index
    %c0_7 = arith.constant 0 : index
    %10 = vector.load %arg4[%c0_6, %c0_7] : memref<8x8xbf16, #tpu.memory_space<vmem>>, vector<8x8xbf16>
    %cst_8 = arith.constant dense<0.000000e+00> : vector<8x8xf32>
    %11 = tpu.matmul %9, %10, %cst_8 {dimension_numbers = #tpu.dot_dimension_numbers<[1], [0], [0], [1], [0, 0, 1, 1], [], []>} : vector<8x8xbf16>, vector<8x8xbf16>, vector<8x8xf32> -> vector<8x8xf32>
    %c0_9 = arith.constant 0 : index
    %c0_10 = arith.constant 0 : index
    %12 = vector.load %arg5[%c0_9, %c0_10] : memref<1x8xf32, #tpu.memory_space<vmem>>, vector<1x8xf32>
    %13 = vector.broadcast %12 : vector<1x8xf32> to vector<8x8xf32>
    %14 = arith.addf %11, %13 : vector<8x8xf32>
    %cst_11 = arith.constant 0.000000e+00 : f32
    %15 = vector.broadcast %cst_11 : f32 to vector<8x8xf32>
    %16 = arith.maximumf %14, %15 : vector<8x8xf32>
    %17 = arith.truncf %16 : vector<8x8xf32> to vector<8x8xbf16>
    %c0_12 = arith.constant 0 : index
    %c0_13 = arith.constant 0 : index
    %18 = vector.load %arg6[%c0_12, %c0_13] : memref<8x3xbf16, #tpu.memory_space<vmem>>, vector<8x3xbf16>
    %cst_14 = arith.constant dense<0.000000e+00> : vector<8x3xf32>
    %19 = tpu.matmul %17, %18, %cst_14 {dimension_numbers = #tpu.dot_dimension_numbers<[1], [0], [0], [1], [0, 0, 1, 1], [], []>} : vector<8x8xbf16>, vector<8x3xbf16>, vector<8x3xf32> -> vector<8x3xf32>
    %c0_15 = arith.constant 0 : index
    %c0_16 = arith.constant 0 : index
    %20 = vector.load %arg7[%c0_15, %c0_16] : memref<1x3xf32, #tpu.memory_space<vmem>>, vector<1x3xf32>
    %21 = vector.broadcast %20 : vector<1x3xf32> to vector<8x3xf32>
    %22 = arith.addf %19, %21 : vector<8x3xf32>
    %c0_17 = arith.constant 0 : index
    %c0_18 = arith.constant 0 : index
    %23 = vector.load %arg8[%c0_17, %c0_18] : memref<8x3xf32, #tpu.memory_space<vmem>>, vector<8x3xf32>
    tpu.vector_store %arg8[%c0_17, %c0_18], %22 {strides = array<i32>} : memref<8x3xf32, #tpu.memory_space<vmem>>, vector<8x3xf32>,
    return
  }
  func.func @transform_0(%arg0: i32) -> (i32, i32) {
    %c0_i32 = arith.constant 0 : i32
    %c0_i32_0 = arith.constant 0 : i32
    return %arg0, %c0_i32 : i32, i32
  }
  func.func @transform_1(%arg0: i32) -> (i32, i32) {
    %c0_i32 = arith.constant 0 : i32
    %c0_i32_0 = arith.constant 0 : i32
    %c0_i32_1 = arith.constant 0 : i32
    return %c0_i32, %c0_i32_0 : i32, i32
  }
  func.func @transform_2(%arg0: i32) -> (i32, i32) {
    %c0_i32 = arith.constant 0 : i32
    %c0_i32_0 = arith.constant 0 : i32
    %c0_i32_1 = arith.constant 0 : i32
    return %c0_i32, %c0_i32_0 : i32, i32
  }
  func.func @transform_3(%arg0: i32) -> (i32, i32) {
    %c0_i32 = arith.constant 0 : i32
    %c0_i32_0 = arith.constant 0 : i32
    %c0_i32_1 = arith.constant 0 : i32
    return %c0_i32, %c0_i32_0 : i32, i32
  }
  func.func @transform_4(%arg0: i32) -> (i32, i32) {
    %c0_i32 = arith.constant 0 : i32
    %c0_i32_0 = arith.constant 0 : i32
    %c0_i32_1 = arith.constant 0 : i32
    return %c0_i32, %c0_i32_0 : i32, i32
  }
  func.func @transform_5(%arg0: i32) -> (i32, i32) {
    %c0_i32 = arith.constant 0 : i32
    %c0_i32_0 = arith.constant 0 : i32
    %c0_i32_1 = arith.constant 0 : i32
    return %c0_i32, %c0_i32_0 : i32, i32
  }
  func.func @transform_6(%arg0: i32) -> (i32, i32) {
    %c0_i32 = arith.constant 0 : i32
    %c0_i32_0 = arith.constant 0 : i32
    %c0_i32_1 = arith.constant 0 : i32
    return %c0_i32, %c0_i32_0 : i32, i32
  }
  func.func @transform_7(%arg0: i32) -> (i32, i32) {
    %c0_i32 = arith.constant 0 : i32
    %c0_i32_0 = arith.constant 0 : i32
    return %arg0, %c0_i32 : i32, i32
  }
}

</mosaic_0001>

<bundles_post_ra>
// kernel: iris_model_forward.1
= control target key start
LH: loop header
LB: loop body
LE: loop exit
PB: predicated region body
PF: predicated region fallthrough
CT: control target
= control target key end

     0   :  { %vm41_vm0 = vcmask 1041408   ;;  %v237_v0 = vmov 0.0   ;;  %vm238_vm1 = vmmov 0   ;;  %vm37_vm2 = vcmask 31744   ;;  %s303_s1 = inlined_call_operand.vmem [shape: bf16[4,8], index: 1, kind: input, shape index: {}]   ;;  %s304_s0 = inlined_call_operand.vmem [shape: f32[8,4], index: 0, kind: input, shape index: {}]   ;;  %s305_s3 = inlined_call_operand.vmem [shape: bf16[8,8], index: 3, kind: input, shape index: {}]   ;;  %s306_s5 = inlined_call_operand.vmem [shape: bf16[8,3], index: 5, kind: input, shape index: {}]   ;;  %s307_s2 = inlined_call_operand.vmem [shape: f32[1,8], index: 2, kind: input, shape index: {}]   ;;  %s308_s4 = inlined_call_operand.vmem [shape: f32[1,8], index: 4, kind: input, shape index: {}]   ;;  %s309_s6 = inlined_call_operand.vmem [shape: f32[1,3], index: 6, kind: input, shape index: {}]   ;;  %s310_s7 = inlined_call_operand.vmem [shape: f32[8,3], index: 7, kind: output, shape index: {}]  }
   0x1   :  { %217 = vmatprep.subr.bf16.mxu0 %v237_v0  ;;  %v29_v1 = vld [vmem:[%s303_s1] sm:$0x3]  ;;  %219 = vmatprep.mubr.msk.bf16.mxu0 %vm238_vm1, %v237_v0  ;;  %vm99_vm3 = vcmask 1043456   ;;  %vm95_vm4 = vcmask 64512   ;;  %vm199_vm5 = vcmask 23552  }
   0x2   :  { %v27_v2 = vld [vmem:[%s304_s0] sm:$0xff]  ;;  %v43_v3 = vsel %vm41_vm0, %v29_v1, 0  ;;  %223 = vmatprep.subr.bf16.mxu1 %v237_v0  ;;  %225 = vmatprep.mubr.msk.bf16.mxu1 %vm238_vm1, %v237_v0 }
   0x3   :  { %v28_v4 = vpack.c.bf16 %v27_v2, %v27_v2  ;;  %218 = vmatpush3.bf16.msra.mxu0 %v43_v3  ;;  %v87_v5 = vld [vmem:[%s305_s3] sm:$0xf] }
   0x4   :  { %229 = vmatprep.subr.bf16.mxu0 %v237_v0  ;;  %v101_v6 = vsel %vm99_vm3, %v87_v5, 0  ;;  %v145_v7 = vld [vmem:[%s306_s5] sm:$0xf] }
   0x5   :  { %224 = vmatpush3.bf16.msra.mxu1 %v101_v6  ;;  %v157_v8 = vsel %vm99_vm3, %v145_v7, 0  ;;  %v205_v9 = vld [vmem:[%s307_s2] ss:$0 sm:$0xff] }
   0x6   :  { %220 = vmatmul.mubr.msk.bf16.vlgmr.msra.gmra.mxu0 %vm37_vm2, %v28_v4  ;;  %v207_v17 = vld [vmem:[%s308_s4] ss:$0 sm:$0xff] }
   0x7   :  { %231 = vmatprep.mubr.msk.bf16.mxu0 %vm238_vm1, %v237_v0  ;;  %230 = vmatpush3.bf16.msra.mxu0 %v157_v8  ;;  %v209_v25 = vld [vmem:[%s309_s6] ss:$0 sm:$0xff] }
  0xc6   :  { %v79_v10 = vpop.f32.mrf.mxu0 }
  0xc7   :  { %v80_v11 = vadd.f32 %v205_v9, %v79_v10 }
  0xc8   :  { %v221_v12 = vpop.f32.mrf.mxu0 }
  0xc9   :  { %v85_v13 = vmax.f32 %v80_v11, 0.0 }
  0xca   :  { %v82_v14 = vpop.f32.mrf.mxu0 }
  0xcb   :  { %v86_v15 = vpack.c.bf16 %v85_v13, %v85_v13 }
  0xcc   :  { %v222_v16 = vpop.f32.mrf.mxu0 }
  0xcd   :  { %226 = vmatmul.mubr.msk.bf16.vlgmr.msra.gmra.mxu1 %vm95_vm4, %v86_v15 }
 0x18d   :  { %v137_v18 = vpop.f32.mrf.mxu1 }
 0x18e   :  { %v138_v19 = vadd.f32 %v207_v17, %v137_v18 }
 0x18f   :  { %v227_v20 = vpop.f32.mrf.mxu1 }
 0x190   :  { %v143_v21 = vmax.f32 %v138_v19, 0.0 }
 0x191   :  { %v140_v22 = vpop.f32.mrf.mxu1 }
 0x192   :  { %v144_v23 = vpack.c.bf16 %v143_v21, %v143_v21 }
 0x193   :  { %v228_v24 = vpop.f32.mrf.mxu1 }
 0x194   :  { %232 = vmatmul.mubr.msk.bf16.vlgmr.msra.gmra.mxu0 %vm95_vm4, %v144_v23 }
 0x254   :  { %v193_v26 = vpop.f32.mrf.mxu0 }
 0x255   :  { %v194_v27 = vadd.f32 %v209_v25, %v193_v26 }
 0x256   :  { %v233_v28 = vpop.f32.mrf.mxu0 }
 0x257   :  { %200 = vst.msk [vmem:[%s310_s7] sm:$0xff] %vm199_vm5, %v194_v27 }
 0x258   :  { %v196_v29 = vpop.f32.mrf.mxu0 }
 0x25a   :  { %v234_v30 = vpop.f32.mrf.mxu0 }

</bundles_post_ra>
